<compile_context>
chip_gen: v5e
topology: v5e:2x2
jax: 0.10.0
libtpu: 0.0.40
codegen_flags: <defaults>
</compile_context>

<pallas_src>
import functools

import jax
import jax.numpy as jnp
from jax import lax
from jax.experimental import pallas as pl
from jax.experimental.pallas import tpu as pltpu


def _attention_kernel(x_ref, wqkv_ref, bqkv_ref, wo_ref, bo_ref, mask_ref,
                      o_ref, *, batch_block, seq_len, head_count, head_dim):
    """One grid step == `batch_block` batch elements (contiguous rows).

    x_ref    : (batch_block*S, D)  VMEM
    wqkv_ref : (D, 3D)             VMEM  fused (in,out); 1/sqrt(hd) folded into Q cols
    bqkv_ref : (1, 3D)             VMEM
    wo_ref   : (D, D)              VMEM  (in,out)
    bo_ref   : (1, D)              VMEM
    mask_ref : (R, R)              VMEM  R = batch_block*H*S, block-diag 0 / -1e30
    o_ref    : (batch_block*S, D)  VMEM
    """
    BB, S, H, hd = batch_block, seq_len, head_count, head_dim
    D = H * hd
    rows = BB * S                     # rows of x handled in this step

    x = x_ref[...]                                                     # (rows, D)

    # 1) Fused Q/K/V projection: ONE wide MXU push (N = 3D). Scale pre-folded.
    qkv = jnp.dot(x, wqkv_ref[...],
                  preferred_element_type=jnp.float32) + bqkv_ref[0]    # (rows, 3D)

    # 2) Restack heads onto the sublane axis once: (rows, 3D) -> 3 x (R, hd),
    #    stacked-row order = (head, batch, seq). Lane slices + sublane concat
    #    only (no lane-axis reshape/transpose).
    def stack(col0):
        return jnp.concatenate(
            [qkv[:, col0 + h * hd: col0 + (h + 1) * hd] for h in range(H)],
            axis=0)                                                    # (R, hd)

    q_st = stack(0)          # scale already folded into the weight
    k_st = stack(D)
    v_st = stack(2 * D)

    # 3) ONE score matmul for all (batch, head) blocks; contract the last dims
    #    of both operands (no explicit K transpose). Block-diagonal finite
    #    -1e30 mask keeps blocks independent.
    contract_last = (((1,), (1,)), ((), ()))
    s = lax.dot_general(q_st, k_st, contract_last,
                        preferred_element_type=jnp.float32)            # (R, R)
    s = s + mask_ref[...]

    # 4) ONE numerically stable softmax over the last axis (f32).
    s = s - jnp.max(s, axis=-1, keepdims=True)
    p = jnp.exp(s)
    denom = jnp.sum(p, axis=-1, keepdims=True)
    r = pl.reciprocal(denom, approx=True)      # EUP slot, co-issues for free
    r = r * (2.0 - denom * r)                  # one Newton step -> f32 accurate
    p = p * r

    # attn_dropout: eval mode -> identity (no-op).

    # 5) ONE PV matmul.
    pv = jnp.dot(p, v_st, preferred_element_type=jnp.float32)          # (R, hd)

    # 6) Un-stack once (cheap sublane slices + one lane concat) and do a
    #    single output-projection matmul.
    out_heads = jnp.concatenate(
        [pv[h * rows:(h + 1) * rows, :] for h in range(H)], axis=1)    # (rows, D)
    out = jnp.dot(out_heads, wo_ref[...],
                  preferred_element_type=jnp.float32) + bo_ref[0]      # (rows, D)

    o_ref[...] = out.astype(o_ref.dtype)


def _tensorcores_per_chip():
    """2 on v7x (two TensorCores per chip), 1 on v5e/v6e; safe fallback 1."""
    try:
        kind = jax.devices()[0].device_kind.lower()
    except Exception:
        return 1
    return 2 if ("v7" in kind or "7x" in kind) else 1


def prepare_attention_params(params, head_count):
    """One-time weight glue, hoisted out of the per-call path.

    Fuses wq|wk|wv into a single (D, 3D) weight and (1, 3D) bias in (in, out)
    layout and folds the 1/sqrt(head_dim) scale into the Q columns/bias.
    Input params follow the PyTorch nn.Linear convention ((out, in) weights).
    """
    D = params["wq"].shape[0]
    head_dim = D // head_count
    scale = 1.0 / (head_dim ** 0.5)
    wqkv = jnp.concatenate(
        [params["wq"].T * scale, params["wk"].T, params["wv"].T], axis=1)
    bqkv = jnp.concatenate(
        [params["bq"] * scale, params["bk"], params["bv"]]).reshape(1, 3 * D)
    return {
        "wqkv": wqkv,                        # (D, 3D)
        "bqkv": bqkv,                        # (1, 3D)
        "wo": params["wo"].T,                # (D, D) (in, out)
        "bo": params["bo"].reshape(1, D),    # (1, D)
    }


def attention_forward(x, fused, head_count, batch_block=None):
    """x: (B, S, D) float32; fused: output of prepare_attention_params."""
    B, S, D = x.shape
    head_dim = D // head_count

    if batch_block is None:
        cores = _tensorcores_per_chip()
        if cores > 1 and B % cores == 0:
            batch_block = B // cores   # v7x: one grid step per TensorCore
        else:
            batch_block = B            # v5e/v6e: collapse the grid to 1 step
    steps = B // batch_block

    rows = batch_block * S
    R = head_count * rows
    # Precomputed block-diagonal mask: stacked rows/cols ordered
    # (head, batch, seq); entries in different (head, batch) blocks get a
    # large finite negative (NOT -inf, avoids inf-inf -> NaN).
    blk = jnp.arange(R, dtype=jnp.int32) // S
    mask = jnp.where(blk[:, None] == blk[None, :], 0.0, -1e30).astype(jnp.float32)

    # Flatten to (B*S, D): each grid step reads/writes a contiguous slab.
    x_flat = x.reshape(B * S, D)

    kernel = functools.partial(
        _attention_kernel, batch_block=batch_block, seq_len=S,
        head_count=head_count, head_dim=head_dim)

    out_flat = pl.pallas_call(
        kernel,
        out_shape=jax.ShapeDtypeStruct((B * S, D), x.dtype),
        grid_spec=pltpu.PrefetchScalarGridSpec(
            num_scalar_prefetch=0,
            grid=(steps,),
            in_specs=[
                pl.BlockSpec((rows, D), lambda b: (b, 0)),      # x slab
                pl.BlockSpec((D, 3 * D), lambda b: (0, 0)),     # fused qkv W
                pl.BlockSpec((1, 3 * D), lambda b: (0, 0)),     # fused qkv b
                pl.BlockSpec((D, D), lambda b: (0, 0)),         # out_proj W
                pl.BlockSpec((1, D), lambda b: (0, 0)),         # out_proj b
                pl.BlockSpec((R, R), lambda b: (0, 0)),         # block-diag mask
            ],
            out_specs=pl.BlockSpec((rows, D), lambda b: (b, 0)),
        ),
        compiler_params=pltpu.CompilerParams(
            dimension_semantics=("parallel",)),
    )(x_flat, fused["wqkv"], fused["bqkv"], fused["wo"], fused["bo"], mask)

    return out_flat.reshape(B, S, D)


def _reference_forward(x, params, head_count):
    """Plain-JAX reference mirroring the PyTorch forward (eval mode)."""
    B, S, D = x.shape
    hd = D // head_count

    def lin(t, w, b):
        return t @ w.T + b

    q = lin(x, params["wq"], params["bq"]).reshape(B, S, head_count, hd).transpose(0, 2, 1, 3)
    k = lin(x, params["wk"], params["bk"]).reshape(B, S, head_count, hd).transpose(0, 2, 1, 3)
    v = lin(x, params["wv"], params["bv"]).reshape(B, S, head_count, hd).transpose(0, 2, 1, 3)
    s = jnp.einsum("bhqd,bhkd->bhqk", q, k) / (hd ** 0.5)
    p = jax.nn.softmax(s, axis=-1)
    o = jnp.einsum("bhqk,bhkd->bhqd", p, v).transpose(0, 2, 1, 3).reshape(B, S, D)
    return lin(o, params["wo"], params["bo"])


if __name__ == "__main__":
    # Small shapes consistent with the module: batch=2, seq=8, in_dim=32, heads=4.
    B, S, D = 2, 8, 32
    HEADS = 4

    key = jax.random.PRNGKey(0)
    keys = jax.random.split(key, 9)
    bound = 1.0 / (D ** 0.5)  # PyTorch nn.Linear default init range

    params = {
        "wq": jax.random.uniform(keys[0], (D, D), jnp.float32, -bound, bound),
        "bq": jax.random.uniform(keys[1], (D,), jnp.float32, -bound, bound),
        "wk": jax.random.uniform(keys[2], (D, D), jnp.float32, -bound, bound),
        "bk": jax.random.uniform(keys[3], (D,), jnp.float32, -bound, bound),
        "wv": jax.random.uniform(keys[4], (D, D), jnp.float32, -bound, bound),
        "bv": jax.random.uniform(keys[5], (D,), jnp.float32, -bound, bound),
        "wo": jax.random.uniform(keys[6], (D, D), jnp.float32, -bound, bound),
        "bo": jax.random.uniform(keys[7], (D,), jnp.float32, -bound, bound),
    }
    x = jax.random.normal(keys[8], (B, S, D), jnp.float32)

    # Weight glue hoisted: fuse/transpose/scale once, outside the call path.
    fused = prepare_attention_params(params, HEADS)

    # Forward is jitted so the mask build + any residual glue constant-fold.
    fwd = jax.jit(functools.partial(attention_forward, head_count=HEADS))
    out = fwd(x, fused)
    out = jax.block_until_ready(out)

    ref = _reference_forward(x, params, HEADS)
    assert out.shape == (B, S, D)
    assert jnp.allclose(out, ref, atol=1e-4, rtol=1e-4), "mismatch vs reference"

    print("KERNEL_OK")
</pallas_src>

<mosaic_0001>
module attributes {stable_mosaic.version = 11 : i64} {
  func.func @_attention_kernel(%arg0: i32, %arg1: memref<16x32xf32, #tpu.memory_space<vmem>>, %arg2: memref<32x96xf32, #tpu.memory_space<vmem>>, %arg3: memref<1x96xf32, #tpu.memory_space<vmem>>, %arg4: memref<32x32xf32, #tpu.memory_space<vmem>>, %arg5: memref<1x32xf32, #tpu.memory_space<vmem>>, %arg6: memref<64x64xf32, #tpu.memory_space<vmem>>, %arg7: memref<16x32xf32, #tpu.memory_space<vmem>>) attributes {dimension_semantics = [#tpu.dimension_semantics<parallel>], iteration_bounds = array<i64: 1>, scalar_prefetch = 0 : i64, scratch_operands = 0 : i64, tpu.core_type = #tpu.core_type<tc>, window_params = [{transform_indices = @transform_0, window_bounds = array<i64: 16, 32>}, {pipeline_mode = #tpu.pipeline_mode<synchronous>, transform_indices = @transform_1, window_bounds = array<i64: 32, 96>}, {pipeline_mode = #tpu.pipeline_mode<synchronous>, transform_indices = @transform_2, window_bounds = array<i64: 1, 96>}, {pipeline_mode = #tpu.pipeline_mode<synchronous>, transform_indices = @transform_3, window_bounds = array<i64: 32, 32>}, {pipeline_mode = #tpu.pipeline_mode<synchronous>, transform_indices = @transform_4, window_bounds = array<i64: 1, 32>}, {pipeline_mode = #tpu.pipeline_mode<synchronous>, transform_indices = @transform_5, window_bounds = array<i64: 64, 64>}, {transform_indices = @transform_6, window_bounds = array<i64: 16, 32>}]} {
    %c0 = arith.constant 0 : index
    %c0_0 = arith.constant 0 : index
    %0 = vector.load %arg1[%c0, %c0_0] : memref<16x32xf32, #tpu.memory_space<vmem>>, vector<16x32xf32>
    %c0_1 = arith.constant 0 : index
    %c0_2 = arith.constant 0 : index
    %1 = vector.load %arg2[%c0_1, %c0_2] : memref<32x96xf32, #tpu.memory_space<vmem>>, vector<32x96xf32>
    %cst = arith.constant dense<0.000000e+00> : vector<16x96xf32>
    %2 = tpu.matmul %0, %1, %cst {dimension_numbers = #tpu.dot_dimension_numbers<[1], [0], [0], [1], [0, 0, 1, 1], [], []>} : vector<16x32xf32>, vector<32x96xf32>, vector<16x96xf32> -> vector<16x96xf32>
    %c0_3 = arith.constant 0 : index
    %c0_4 = arith.constant 0 : index
    %3 = vector.load %arg3[%c0_3, %c0_4] : memref<1x96xf32, #tpu.memory_space<vmem>>, vector<1x96xf32>
    %4 = vector.shape_cast %3 : vector<1x96xf32> to vector<96xf32>
    %5 = vector.shape_cast %4 : vector<96xf32> to vector<1x96xf32>
    %6 = vector.broadcast %5 : vector<1x96xf32> to vector<16x96xf32>
    %7 = arith.addf %2, %6 : vector<16x96xf32>
    %8 = vector.extract_strided_slice %7 {offsets = [0, 0], sizes = [16, 8], strides = [1, 1]} : vector<16x96xf32> to vector<16x8xf32>
    %9 = vector.extract_strided_slice %7 {offsets = [0, 8], sizes = [16, 8], strides = [1, 1]} : vector<16x96xf32> to vector<16x8xf32>
    %10 = vector.extract_strided_slice %7 {offsets = [0, 16], sizes = [16, 8], strides = [1, 1]} : vector<16x96xf32> to vector<16x8xf32>
    %11 = vector.extract_strided_slice %7 {offsets = [0, 24], sizes = [16, 8], strides = [1, 1]} : vector<16x96xf32> to vector<16x8xf32>
    %12 = tpu.concatenate %8, %9, %10, %11 in 0 : vector<16x8xf32>, vector<16x8xf32>, vector<16x8xf32>, vector<16x8xf32> -> vector<64x8xf32>
    %13 = vector.extract_strided_slice %7 {offsets = [0, 32], sizes = [16, 8], strides = [1, 1]} : vector<16x96xf32> to vector<16x8xf32>
    %14 = vector.extract_strided_slice %7 {offsets = [0, 40], sizes = [16, 8], strides = [1, 1]} : vector<16x96xf32> to vector<16x8xf32>
    %15 = vector.extract_strided_slice %7 {offsets = [0, 48], sizes = [16, 8], strides = [1, 1]} : vector<16x96xf32> to vector<16x8xf32>
    %16 = vector.extract_strided_slice %7 {offsets = [0, 56], sizes = [16, 8], strides = [1, 1]} : vector<16x96xf32> to vector<16x8xf32>
    %17 = tpu.concatenate %13, %14, %15, %16 in 0 : vector<16x8xf32>, vector<16x8xf32>, vector<16x8xf32>, vector<16x8xf32> -> vector<64x8xf32>
    %18 = vector.extract_strided_slice %7 {offsets = [0, 64], sizes = [16, 8], strides = [1, 1]} : vector<16x96xf32> to vector<16x8xf32>
    %19 = vector.extract_strided_slice %7 {offsets = [0, 72], sizes = [16, 8], strides = [1, 1]} : vector<16x96xf32> to vector<16x8xf32>
    %20 = vector.extract_strided_slice %7 {offsets = [0, 80], sizes = [16, 8], strides = [1, 1]} : vector<16x96xf32> to vector<16x8xf32>
    %21 = vector.extract_strided_slice %7 {offsets = [0, 88], sizes = [16, 8], strides = [1, 1]} : vector<16x96xf32> to vector<16x8xf32>
    %22 = tpu.concatenate %18, %19, %20, %21 in 0 : vector<16x8xf32>, vector<16x8xf32>, vector<16x8xf32>, vector<16x8xf32> -> vector<64x8xf32>
    %cst_5 = arith.constant dense<0.000000e+00> : vector<64x64xf32>
    %23 = tpu.matmul %12, %17, %cst_5 {dimension_numbers = #tpu.dot_dimension_numbers<[1], [1], [0], [0], [0, 0, 1, 0], [], []>} : vector<64x8xf32>, vector<64x8xf32>, vector<64x64xf32> -> vector<64x64xf32>
    %c0_6 = arith.constant 0 : index
    %c0_7 = arith.constant 0 : index
    %24 = vector.load %arg6[%c0_6, %c0_7] : memref<64x64xf32, #tpu.memory_space<vmem>>, vector<64x64xf32>
    %25 = arith.addf %23, %24 : vector<64x64xf32>
    %cst_8 = arith.constant dense<0xFF800000> : vector<64xf32>
    %26 = vector.multi_reduction <maximumf>, %25, %cst_8 [1] : vector<64x64xf32> to vector<64xf32>
    %27 = vector.shape_cast %26 : vector<64xf32> to vector<64x1xf32>
    %28 = vector.broadcast %27 : vector<64x1xf32> to vector<64x64xf32>
    %29 = arith.subf %25, %28 : vector<64x64xf32>
    %30 = math.exp %29 : vector<64x64xf32>
    %cst_9 = arith.constant dense<0.000000e+00> : vector<64xf32>
    %31 = vector.multi_reduction <add>, %30, %cst_9 [1] : vector<64x64xf32> to vector<64xf32>
    %32 = vector.shape_cast %31 : vector<64xf32> to vector<64x1xf32>
    %33 = tpu.reciprocal %32 {approx = true} : vector<64x1xf32> -> vector<64x1xf32>
    %34 = arith.mulf %32, %33 : vector<64x1xf32>
    %cst_10 = arith.constant 2.000000e+00 : f32
    %35 = vector.broadcast %cst_10 : f32 to vector<64x1xf32>
    %36 = arith.subf %35, %34 : vector<64x1xf32>
    %37 = arith.mulf %33, %36 : vector<64x1xf32>
    %38 = vector.broadcast %37 : vector<64x1xf32> to vector<64x64xf32>
    %39 = arith.mulf %30, %38 : vector<64x64xf32>
    %cst_11 = arith.constant dense<0.000000e+00> : vector<64x8xf32>
    %40 = tpu.matmul %39, %22, %cst_11 {dimension_numbers = #tpu.dot_dimension_numbers<[1], [0], [0], [1], [0, 0, 1, 1], [], []>} : vector<64x64xf32>, vector<64x8xf32>, vector<64x8xf32> -> vector<64x8xf32>
    %41 = vector.extract_strided_slice %40 {offsets = [0, 0], sizes = [16, 8], strides = [1, 1]} : vector<64x8xf32> to vector<16x8xf32>
    %42 = vector.extract_strided_slice %40 {offsets = [16, 0], sizes = [16, 8], strides = [1, 1]} : vector<64x8xf32> to vector<16x8xf32>
    %43 = vector.extract_strided_slice %40 {offsets = [32, 0], sizes = [16, 8], strides = [1, 1]} : vector<64x8xf32> to vector<16x8xf32>
    %44 = vector.extract_strided_slice %40 {offsets = [48, 0], sizes = [16, 8], strides = [1, 1]} : vector<64x8xf32> to vector<16x8xf32>
    %45 = tpu.concatenate %41, %42, %43, %44 in 1 : vector<16x8xf32>, vector<16x8xf32>, vector<16x8xf32>, vector<16x8xf32> -> vector<16x32xf32>
    %c0_12 = arith.constant 0 : index
    %c0_13 = arith.constant 0 : index
    %46 = vector.load %arg4[%c0_12, %c0_13] : memref<32x32xf32, #tpu.memory_space<vmem>>, vector<32x32xf32>
    %cst_14 = arith.constant dense<0.000000e+00> : vector<16x32xf32>
    %47 = tpu.matmul %45, %46, %cst_14 {dimension_numbers = #tpu.dot_dimension_numbers<[1], [0], [0], [1], [0, 0, 1, 1], [], []>} : vector<16x32xf32>, vector<32x32xf32>, vector<16x32xf32> -> vector<16x32xf32>
    %c0_15 = arith.constant 0 : index
    %c0_16 = arith.constant 0 : index
    %48 = vector.load %arg5[%c0_15, %c0_16] : memref<1x32xf32, #tpu.memory_space<vmem>>, vector<1x32xf32>
    %49 = vector.shape_cast %48 : vector<1x32xf32> to vector<32xf32>
    %50 = vector.shape_cast %49 : vector<32xf32> to vector<1x32xf32>
    %51 = vector.broadcast %50 : vector<1x32xf32> to vector<16x32xf32>
    %52 = arith.addf %47, %51 : vector<16x32xf32>
    %c0_17 = arith.constant 0 : index
    %c0_18 = arith.constant 0 : index
    %53 = vector.load %arg7[%c0_17, %c0_18] : memref<16x32xf32, #tpu.memory_space<vmem>>, vector<16x32xf32>
    tpu.vector_store %arg7[%c0_17, %c0_18], %52 {strides = array<i32>} : memref<16x32xf32, #tpu.memory_space<vmem>>, vector<16x32xf32>,
    return
  }
  func.func @transform_0(%arg0: i32) -> (i32, i32) {
    %c0_i32 = arith.constant 0 : i32
    %c0_i32_0 = arith.constant 0 : i32
    return %arg0, %c0_i32 : i32, i32
  }
  func.func @transform_1(%arg0: i32) -> (i32, i32) {
    %c0_i32 = arith.constant 0 : i32
    %c0_i32_0 = arith.constant 0 : i32
    %c0_i32_1 = arith.constant 0 : i32
    return %c0_i32, %c0_i32_0 : i32, i32
  }
  func.func @transform_2(%arg0: i32) -> (i32, i32) {
    %c0_i32 = arith.constant 0 : i32
    %c0_i32_0 = arith.constant 0 : i32
    %c0_i32_1 = arith.constant 0 : i32
    return %c0_i32, %c0_i32_0 : i32, i32
  }
  func.func @transform_3(%arg0: i32) -> (i32, i32) {
    %c0_i32 = arith.constant 0 : i32
    %c0_i32_0 = arith.constant 0 : i32
    %c0_i32_1 = arith.constant 0 : i32
    return %c0_i32, %c0_i32_0 : i32, i32
  }
  func.func @transform_4(%arg0: i32) -> (i32, i32) {
    %c0_i32 = arith.constant 0 : i32
    %c0_i32_0 = arith.constant 0 : i32
    %c0_i32_1 = arith.constant 0 : i32
    return %c0_i32, %c0_i32_0 : i32, i32
  }
  func.func @transform_5(%arg0: i32) -> (i32, i32) {
    %c0_i32 = arith.constant 0 : i32
    %c0_i32_0 = arith.constant 0 : i32
    %c0_i32_1 = arith.constant 0 : i32
    return %c0_i32, %c0_i32_0 : i32, i32
  }
  func.func @transform_6(%arg0: i32) -> (i32, i32) {
    %c0_i32 = arith.constant 0 : i32
    %c0_i32_0 = arith.constant 0 : i32
    return %arg0, %c0_i32 : i32, i32
  }
}

</mosaic_0001>

<bundles_post_ra>
// kernel: attention_forward.1
= control target key start
LH: loop header
LB: loop body
LE: loop exit
PB: predicated region body
PF: predicated region fallthrough
CT: control target
= control target key end

     0   :  { %11 = vsyncpa [#allocation3], 0  ;;  %s899_s0 = inlined_call_operand.hbm [shape: f32[16,32], index: 0, kind: input, shape index: {}]   ;;  %s900_s1 = inlined_call_operand.vmem [shape: f32[32,96], index: 1, kind: input, shape index: {}]   ;;  %s901_s2 = inlined_call_operand.vmem [shape: f32[1,96], index: 2, kind: input, shape index: {}]   ;;  %s902_s3 = inlined_call_operand.vmem [shape: f32[32,32], index: 3, kind: input, shape index: {}]   ;;  %s903_s4 = inlined_call_operand.vmem [shape: f32[1,32], index: 4, kind: input, shape index: {}]   ;;  %s904_s5 = inlined_call_operand.vmem [shape: f32[64,64], index: 5, kind: input, shape index: {}]   ;;  %s905_s6 = inlined_call_operand.hbm [shape: f32[16,32], index: 6, kind: output, shape index: {}]  }
   0x1   :  { %12 = vsyncpa [#allocation4], 0  ;;  %s17_s23 = sshll.u32 %s899_s0, 4  ;;  %s645_s24 = smov [#allocation2]   ;;  %s18_s23 = int_to_ptr.hbm [resolvable:$true] %s17_s23 }
   0x2   :  { %s19_s25 = sshll.u32 %s645_s24, 4  ;;  %s646_s26 = smov 128   ;;  %s20_s25 = int_to_ptr.vmem [resolvable:$true] %s19_s25 }
   0x3   :  { %s647_s27 = smov 8  }
   0x4   :  { %25 = dma.hbm_to_vmem [thread:$0]  %s18_s23, 256, %s20_s25, [#allocation3], %s646_s26, %s646_s26, %s647_s27  }
   0x5   :  { %641 = dma.done.wait [#allocation3], 256  }
   0x6   :  { %642 = vsyncadd [#allocation3], 4294967040  ;;  %v45_v0 = vld [vmem:[%s900_s1 + $0x18] sm:$0xff]  ;;  %v44_v1 = vld [vmem:[%s900_s1 + $0x10] sm:$0xff]  ;;  %vm50_vm0 = vcmask 261120   ;;  %s648_s13 = smov 120  }
   0x7   :  { %69 = vmatpush.msra.mxu3 %v45_v0  ;;  %v43_v2 = vld [vmem:[%s900_s1 + $0x8] sm:$0xff]  ;;  %v42_v3 = vld [vmem:[%s900_s1] sm:$0xff]  ;;  %s649_s1 = smov 112   ;;  %s650_s14 = smov 104   ;;  %vm118_vm1 = vcmask 64512   ;;  %vm192_vm2 = vcmask 523264  }
   0x8   :  { %v40_v4 = vld [vmem:[#allocation2] sm:$0xff]  ;;  %v41_v5 = vld [vmem:[#allocation2 + $0x8] sm:$0xff]  ;;  %s652_s15 = smov 64   ;;  %v96_v45 = vld [vmem:[%s904_s5 + $0x10] sm:$0xff]  ;;  %s654_s9 = smov 16   ;;  %vm420_vm3 = vcmask 130048  }
   0x9   :  { %70 = vmatpush.msra.mxu3 %v44_v1  ;;  %v559_v7 = vld [vmem:[%s901_s2] ss:$0 sm:$0xff]  ;;  %s651_s2 = smov 96   ;;  %v95_v35 = vld [vmem:[%s904_s5 + $0x8] sm:$0xff]  ;;  %v100_v46 = vld [vmem:[%s904_s5 + $0x30] sm:$0xff]  ;;  %vm423_vm4 = vcmask 195584  }
   0xa   :  { %v94_v29 = vld [vmem:[%s904_s5] sm:$0xff]  ;;  %v99_v36 = vld [vmem:[%s904_s5 + $0x28] sm:$0xff]  ;;  %v97_v53 = vld [vmem:[%s904_s5 + $0x18] sm:$0xff]  ;;  %s655_s17 = smov [#allocation5]   ;;  %s471_s21 = sshll.u32 %s905_s6, 4  ;;  %s472_s21 = int_to_ptr.hbm [resolvable:$true] %s471_s21 }
   0xb   :  { %71 = vmatpush.msra.mxu3 %v43_v2  ;;  %v98_v34 = vld [vmem:[%s904_s5 + $0x20] sm:$0xff]  ;;  %v101_v57 = vld [vmem:[%s904_s5 + $0x38] sm:$0xff]  ;;  %s653_s5 = smov 24   ;;  %s469_s18 = sshll.u32 %s655_s17, 4  ;;  %s470_s18 = int_to_ptr.vmem [resolvable:$true] %s469_s18 }
   0xd   :  { %72 = vmatpush.msra.mxu3 %v42_v3 }
   0xe   :  { %484 = vmatmul.msk.f32.vlgmr.msra.gmra.mxu3 %vm50_vm0, %v40_v4 }
  0x16   :  { %485 = vmatmul.msk.f32.gmra.mxu3 %vm50_vm0, %v41_v5 }
  0x91   :  { %v74_v6 = vpop.f32.mrf.mxu3 }
  0x92   :  { %v719_v10 = vadd.f32 %v559_v7, %v74_v6 }
  0x99   :  { %v77_v8 = vpop.f32.mrf.mxu3 }
  0x9a   :  { %v714_v9 = vadd.f32 %v559_v7, %v77_v8 }
  0x9c   :  { %84 = vrot.lane.b32.xlu2 %v714_v9, %s648_s13  ;;  %88 = vrot.lane.b32.xlu1 %v714_v9, %s649_s1  ;;  %v554_v61 = vpack.i.bf16 %v719_v10, %v714_v9 }
  0x9d   :  { %92 = vrot.lane.b32.xlu0 %v714_v9, %s650_s14 }
  0xa4   :  { %82 = vrot.lane.b32.xlu2 %v719_v10, %s648_s13  ;;  %86 = vrot.lane.b32.xlu1 %v719_v10, %s649_s1 }
  0xa5   :  { %90 = vrot.lane.b32.xlu0 %v719_v10, %s650_s14 }
  0xf6   :  { %v724_v11 = vpop.permute.xlu2 %84 }
  0xfe   :  { %v729_v14 = vpop.permute.xlu2 %82 }
 0x10e   :  { %v726_v12 = vpop.permute.xlu1 %88 }
 0x10f   :  { %v93_v13 = vpop.permute.xlu0 %92  ;;  %112 = vrot.lane.b32.xlu2 %v726_v12, %s651_s2 }
 0x110   :  { %116 = vrot.lane.b32.xlu0 %v93_v13, %s651_s2 }
 0x116   :  { %v731_v15 = vpop.permute.xlu1 %86 }
 0x117   :  { %v91_v16 = vpop.permute.xlu0 %90  ;;  %106 = vrot.lane.b32.xlu2 %v729_v14, %s651_s2  ;;  %v544_v62 = vpack.i.bf16 %v731_v15, %v726_v12 }
 0x118   :  { %110 = vrot.lane.b32.xlu0 %v731_v15, %s651_s2  ;;  %114 = vrot.lane.b32.xlu1 %v91_v16, %s651_s2  ;;  %v539_v17 = vpack.i.bf16 %v91_v16, %v93_v13 }
 0x120   :  { %104 = vrot.lane.b32.xlu0 %v714_v9, %s651_s2  ;;  %108 = vrot.lane.b32.xlu1 %v724_v11, %s651_s2 }
 0x128   :  { %102 = vrot.lane.b32.xlu1 %v719_v10, %s651_s2 }
 0x130   :  { %540 = vrot.lane.b32.xlu1 %v539_v17, %s652_s15 }
 0x169   :  { %v113_v20 = vpop.permute.xlu2 %112 }
 0x171   :  { %v107_v23 = vpop.permute.xlu2 %106 }
 0x182   :  { %v117_v18 = vpop.permute.xlu0 %116 }
 0x183   :  { %486 = vmatpush.xpose.msk.msra.mxu0 %vm118_vm1, %v117_v18  ;;  %512 = vmatpush.xpose.msk.msra.mxu1 %vm118_vm1, %v117_v18 }
 0x18a   :  { %v115_v19 = vpop.permute.xlu1 %114  ;;  %v111_v21 = vpop.permute.xlu0 %110 }
 0x18b   :  { %487 = vmatpush.xpose.msk.msra.mxu0 %vm118_vm1, %v115_v19  ;;  %513 = vmatpush.xpose.msk.msra.mxu1 %vm118_vm1, %v115_v19 }
 0x18f   :  { %488 = vmatpush.xpose.msk.msra.mxu0 %vm118_vm1, %v113_v20  ;;  %514 = vmatpush.xpose.msk.msra.mxu1 %vm118_vm1, %v113_v20 }
 0x192   :  { %v109_v22 = vpop.permute.xlu1 %108  ;;  %v105_v25 = vpop.permute.xlu0 %104 }
 0x193   :  { %489 = vmatpush.xpose.msk.msra.mxu0 %vm118_vm1, %v111_v21  ;;  %515 = vmatpush.xpose.msk.msra.mxu1 %vm118_vm1, %v111_v21 }
 0x197   :  { %490 = vmatpush.xpose.msk.msra.mxu0 %vm118_vm1, %v109_v22  ;;  %516 = vmatpush.xpose.msk.msra.mxu1 %vm118_vm1, %v109_v22 }
 0x19a   :  { %v103_v24 = vpop.permute.xlu1 %102 }
 0x19b   :  { %491 = vmatpush.xpose.msk.msra.mxu0 %vm118_vm1, %v107_v23  ;;  %517 = vmatpush.xpose.msk.msra.mxu1 %vm118_vm1, %v107_v23 }
 0x19f   :  { %492 = vmatpush.xpose.msk.msra.mxu0 %vm118_vm1, %v105_v25  ;;  %518 = vmatpush.xpose.msk.msra.mxu1 %vm118_vm1, %v105_v25 }
 0x1a2   :  { %v541_v26 = vpop.permute.xlu1 %540 }
 0x1a3   :  { %493 = vmatpush.xpose.msk.msra.mxu0 %vm118_vm1, %v103_v24  ;;  %519 = vmatpush.xpose.msk.msra.mxu1 %vm118_vm1, %v103_v24  ;;  %v542_v27 = vunpack.i.l.bf16 %v541_v26  ;;  %v543_v28 = vunpack.i.h.bf16 %v541_v26 }
 0x1a5   :  { %361 = vmatpush.msra.mxu2 %v542_v27  ;;  %520 = vmatpush.msrb.mxu3 %v542_v27 }
 0x1a6   :  { %494 = vmatmul.msk.f32.vlgmr.msra.gmra.mxu0 %vm118_vm1, %v719_v10  ;;  %498 = vmatmul.msk.f32.vlgmr.msra.gmra.mxu1 %vm118_vm1, %v731_v15 }
 0x1a7   :  { %362 = vmatpush.msra.mxu2 %v543_v28  ;;  %521 = vmatpush.msrb.mxu3 %v543_v28 }
 0x1ae   :  { %495 = vmatmul.msk.f32.gmra.mxu0 %vm118_vm1, %v714_v9  ;;  %499 = vmatmul.msk.f32.gmra.mxu1 %vm118_vm1, %v726_v12 }
 0x1b6   :  { %496 = vmatmul.msk.f32.gmra.mxu0 %vm118_vm1, %v729_v14  ;;  %500 = vmatmul.msk.f32.gmra.mxu1 %vm118_vm1, %v91_v16 }
 0x1be   :  { %497 = vmatmul.msk.f32.gmra.mxu0 %vm118_vm1, %v724_v11  ;;  %501 = vmatmul.msk.f32.gmra.mxu1 %vm118_vm1, %v93_v13 }
 0x223   :  { %v168_v30 = vpop.f32.mrf.mxu0  ;;  %v180_v31 = vpop.f32.mrf.mxu1 }
 0x224   :  { %v169_v32 = vadd.f32 %v168_v30, %v94_v29  ;;  %v782_v37 = vadd.f32 %v180_v31, %v98_v34  ;;  %v549_v31 = vpack.i.bf16 %v729_v14, %v724_v11 }
 0x226   :  { %v193_v33 = vsel %vm192_vm2, %v169_v32, -inf  ;;  %v205_v44 = vsel %vm192_vm2, %v782_v37, -inf }
 0x227   :  { %194 = vmax.xlane.f32.xlu2 %v193_v33 }
 0x22b   :  { %v171_v38 = vpop.f32.mrf.mxu0  ;;  %v183_v39 = vpop.f32.mrf.mxu1 }
 0x22c   :  { %v172_v40 = vadd.f32 %v171_v38, %v95_v35  ;;  %v784_v41 = vadd.f32 %v183_v39, %v99_v36 }
 0x22e   :  { %v208_v42 = vsel %vm192_vm2, %v784_v41, -inf  ;;  %v196_v43 = vsel %vm192_vm2, %v172_v40, -inf }
 0x22f   :  { %209 = vmax.xlane.f32.xlu1 %v208_v42  ;;  %197 = vmax.xlane.f32.xlu0 %v196_v43 }
 0x230   :  { %206 = vmax.xlane.f32.xlu2 %v205_v44 }
 0x233   :  { %v174_v47 = vpop.f32.mrf.mxu0  ;;  %v186_v48 = vpop.f32.mrf.mxu1 }
 0x234   :  { %v175_v49 = vadd.f32 %v174_v47, %v96_v45  ;;  %v187_v50 = vadd.f32 %v186_v48, %v100_v46 }
 0x236   :  { %v199_v51 = vsel %vm192_vm2, %v175_v49, -inf  ;;  %v211_v52 = vsel %vm192_vm2, %v187_v50, -inf }
 0x237   :  { %200 = vmax.xlane.f32.xlu1 %v199_v51  ;;  %212 = vmax.xlane.f32.xlu0 %v211_v52 }
 0x23b   :  { %v177_v54 = vpop.f32.mrf.mxu0  ;;  %v189_v58 = vpop.f32.mrf.mxu1 }
 0x23c   :  { %v178_v55 = vadd.f32 %v177_v54, %v97_v53  ;;  %v806_v59 = vadd.f32 %v189_v58, %v101_v57 }
 0x23e   :  { %v202_v56 = vsel %vm192_vm2, %v178_v55, -inf  ;;  %v214_v60 = vsel %vm192_vm2, %v806_v59, -inf }
 0x23f   :  { %203 = vmax.xlane.f32.xlu2 %v202_v56 }
 0x247   :  { %215 = vmax.xlane.f32.xlu2 %v214_v60 }
 0x250   :  { %555 = vrot.lane.b32.xlu1 %v554_v61, %s652_s15 }
 0x25f   :  { %545 = vrot.lane.b32.xlu2 %v544_v62, %s652_s15 }
 0x29a   :  { %v195_v63 = vpop.xlane.xlu2 %194 }
 0x29b   :  { %v217_v0 = vsub.f32 %v169_v32, %v195_v63 }
 0x29d   :  { %v225_v1 = vmul.f32 1.442695, %v217_v0 }
 0x29f   :  { %561 = vpow2.f32 %v225_v1 }
 0x2a2   :  { %v210_v2 = vpop.xlane.xlu1 %209  ;;  %v198_v3 = vpop.xlane.xlu0 %197 }
 0x2a3   :  { %v218_v4 = vsub.f32 %v172_v40, %v198_v3  ;;  %v207_v8 = vpop.xlane.xlu2 %206  ;;  %v222_v22 = vsub.f32 %v784_v41, %v210_v2 }
 0x2a4   :  { %v221_v38 = vsub.f32 %v782_v37, %v207_v8 }
 0x2a5   :  { %v816_v5 = vpop.eup %561  ;;  %v227_v6 = vmul.f32 1.442695, %v218_v4  ;;  %v235_v25 = vmul.f32 1.442695, %v222_v22 }
 0x2a6   :  { %v241_v7 = vsel %vm192_vm2, %v816_v5, 0.0  ;;  %v233_v39 = vmul.f32 1.442695, %v221_v38 }
 0x2a7   :  { %242 = vadd.xlane.f32.xlu0 %v241_v7  ;;  %563 = vpow2.f32 %v227_v6 }
 0x2aa   :  { %v201_v9 = vpop.xlane.xlu1 %200  ;;  %v213_v10 = vpop.xlane.xlu0 %212 }
 0x2ab   :  { %v219_v12 = vsub.f32 %v175_v49, %v201_v9  ;;  %v223_v15 = vsub.f32 %v187_v50, %v213_v10 }
 0x2ad   :  { %v229_v13 = vmul.f32 1.442695, %v219_v12  ;;  %v820_v16 = vpop.eup %563  ;;  %v237_v18 = vmul.f32 1.442695, %v223_v15 }
 0x2ae   :  { %v244_v17 = vsel %vm192_vm2, %v820_v16, 0.0 }
 0x2af   :  { %565 = vpow2.f32 %v229_v13  ;;  %245 = vadd.xlane.f32.xlu0 %v244_v17 }
 0x2b0   :  { %567 = vpow2.f32 %v237_v18 }
 0x2b2   :  { %v204_v19 = vpop.xlane.xlu2 %203 }
 0x2b3   :  { %v220_v20 = vsub.f32 %v178_v55, %v204_v19 }
 0x2b5   :  { %v824_v21 = vpop.eup %565  ;;  %v231_v23 = vmul.f32 1.442695, %v220_v20 }
 0x2b6   :  { %v247_v24 = vsel %vm192_vm2, %v824_v21, 0.0  ;;  %v829_v27 = vpop.eup %567 }
 0x2b7   :  { %569 = vpow2.f32 %v231_v23  ;;  %248 = vadd.xlane.f32.xlu2 %v247_v24  ;;  %v259_v29 = vsel %vm192_vm2, %v829_v27, 0.0 }
 0x2b8   :  { %571 = vpow2.f32 %v235_v25 }
 0x2b9   :  { %573 = vpow2.f32 %v233_v39 }
 0x2ba   :  { %v216_v26 = vpop.xlane.xlu2 %215 }
 0x2bb   :  { %v224_v11 = vsub.f32 %v806_v59, %v216_v26 }
 0x2bd   :  { %v831_v28 = vpop.eup %569  ;;  %v239_v14 = vmul.f32 1.442695, %v224_v11 }
 0x2be   :  { %v250_v30 = vsel %vm192_vm2, %v831_v28, 0.0  ;;  %v839_v33 = vpop.eup %571 }
 0x2bf   :  { %260 = vadd.xlane.f32.xlu2 %v259_v29  ;;  %251 = vadd.xlane.f32.xlu1 %v250_v30  ;;  %v256_v36 = vsel %vm192_vm2, %v839_v33, 0.0  ;;  %v846_v40 = vpop.eup %573  ;;  %575 = vpow2.f32 %v239_v14 }
 0x2c0   :  { %v253_v41 = vsel %vm192_vm2, %v846_v40, 0.0 }
 0x2c2   :  { %v546_v32 = vpop.permute.xlu2 %545  ;;  %v556_v49 = vpop.permute.xlu1 %555 }
 0x2c3   :  { %v547_v34 = vunpack.i.l.bf16 %v546_v32  ;;  %550 = vrot.lane.b32.xlu0 %v549_v31, %s652_s15  ;;  %v548_v35 = vunpack.i.h.bf16 %v546_v32  ;;  %v557_v59 = vunpack.i.l.bf16 %v556_v49  ;;  %v558_v61 = vunpack.i.h.bf16 %v556_v49 }
 0x2c5   :  { %363 = vmatpush.msra.mxu2 %v547_v34  ;;  %522 = vmatpush.msrb.mxu3 %v547_v34  ;;  %v850_v42 = vpop.eup %575 }
 0x2c6   :  { %v262_v43 = vsel %vm192_vm2, %v850_v42, 0.0 }
 0x2c7   :  { %257 = vadd.xlane.f32.xlu1 %v256_v36  ;;  %364 = vmatpush.msra.mxu2 %v548_v35 }
 0x2c8   :  { %523 = vmatpush.msrb.mxu3 %v548_v35 }
 0x2ed   :  { %254 = vadd.xlane.f32.xlu0 %v253_v41 }
 0x2f5   :  { %263 = vadd.xlane.f32.xlu0 %v262_v43  ;;  %v428_v43 = vld [vmem:[%s902_s3 + $0x10] sm:$0xff] }
 0x31a   :  { %v243_v44 = vpop.xlane.xlu0 %242 }
 0x31b   :  { %577 = vrcp.f32 %v243_v44 }
 0x321   :  { %v578_v46 = vpop.eup %577 }
 0x322   :  { %v246_v45 = vpop.xlane.xlu0 %245  ;;  %v273_v47 = vmul.f32 %v578_v46, %v243_v44  ;;  %v427_v44 = vld [vmem:[%s902_s3 + $0x8] sm:$0xff] }
 0x323   :  { %579 = vrcp.f32 %v246_v45 }
 0x324   :  { %v281_v50 = vsub.f32 2.0, %v273_v47 }
 0x326   :  { %v289_v56 = vmul.f32 %v578_v46, %v281_v50 }
 0x328   :  { %v297_v0 = vmul.f32 %v816_v5, %v289_v56 }
 0x329   :  { %v580_v52 = vpop.eup %579 }
 0x32a   :  { %v249_v37 = vpop.xlane.xlu2 %248  ;;  %v274_v57 = vmul.f32 %v580_v52, %v246_v45 }
 0x32c   :  { %v282_v62 = vsub.f32 2.0, %v274_v57  ;;  %v560_v57 = vld [vmem:[%s903_s4] ss:$0 sm:$0xff] }
 0x32e   :  { %v290_v4 = vmul.f32 %v580_v52, %v282_v62 }
 0x330   :  { %v298_v8 = vmul.f32 %v820_v16, %v290_v4 }
 0x332   :  { %v261_v48 = vpop.xlane.xlu2 %260  ;;  %v252_v63 = vpop.xlane.xlu1 %251 }
 0x333   :  { %581 = vrcp.f32 %v261_v48 }
 0x334   :  { %583 = vrcp.f32 %v249_v37 }
 0x335   :  { %v551_v51 = vpop.permute.xlu0 %550  ;;  %585 = vrcp.f32 %v252_v63 }
 0x336   :  { %v552_v53 = vunpack.i.l.bf16 %v551_v51  ;;  %v553_v54 = vunpack.i.h.bf16 %v551_v51 }
 0x338   :  { %365 = vmatpush.msra.mxu2 %v552_v53  ;;  %524 = vmatpush.msrb.mxu3 %v552_v53 }
 0x339   :  { %v582_v55 = vpop.eup %581 }
 0x33a   :  { %v279_v58 = vmul.f32 %v582_v55, %v261_v48  ;;  %366 = vmatpush.msra.mxu2 %v553_v54  ;;  %525 = vmatpush.msrb.mxu3 %v553_v54  ;;  %v584_v1 = vpop.eup %583  ;;  %v258_v18 = vpop.xlane.xlu1 %257 }
 0x33b   :  { %v275_v6 = vmul.f32 %v584_v1, %v249_v37  ;;  %v586_v9 = vpop.eup %585  ;;  %587 = vrcp.f32 %v258_v18  ;;  %v426_v37 = vld [vmem:[%s902_s3] sm:$0xff] }
 0x33c   :  { %v287_v60 = vsub.f32 2.0, %v279_v58  ;;  %367 = vmatpush.msra.mxu2 %v557_v59  ;;  %526 = vmatpush.msrb.mxu3 %v557_v59  ;;  %v276_v10 = vmul.f32 %v586_v9, %v252_v63 }
 0x33d   :  { %v283_v7 = vsub.f32 2.0, %v275_v6 }
 0x33e   :  { %v295_v2 = vmul.f32 %v582_v55, %v287_v60  ;;  %368 = vmatpush.msra.mxu2 %v558_v61  ;;  %527 = vmatpush.msrb.mxu3 %v558_v61  ;;  %v284_v12 = vsub.f32 2.0, %v276_v10 }
 0x33f   :  { %502 = vmatmul.msk.f32.vlgmr.msra.gmra.mxu2 %vm192_vm2, %v297_v0  ;;  %v291_v5 = vmul.f32 %v584_v1, %v283_v7 }
 0x340   :  { %v303_v3 = vmul.f32 %v829_v27, %v295_v2  ;;  %v292_v15 = vmul.f32 %v586_v9, %v284_v12 }
 0x341   :  { %v299_v13 = vmul.f32 %v824_v21, %v291_v5  ;;  %v588_v16 = vpop.eup %587 }
 0x342   :  { %508 = vmatmul.msk.f32.vlgmr.msrb.gmra.mxu3 %vm192_vm2, %v303_v3  ;;  %v300_v17 = vmul.f32 %v831_v28, %v292_v15  ;;  %v278_v24 = vmul.f32 %v588_v16, %v258_v18 }
 0x344   :  { %v286_v21 = vsub.f32 2.0, %v278_v24 }
 0x346   :  { %v294_v28 = vmul.f32 %v588_v16, %v286_v21 }
 0x347   :  { %503 = vmatmul.msk.f32.gmra.mxu2 %vm192_vm2, %v298_v8 }
 0x348   :  { %v302_v34 = vmul.f32 %v839_v33, %v294_v28 }
 0x34f   :  { %504 = vmatmul.msk.f32.gmra.mxu2 %vm192_vm2, %v299_v13 }
 0x357   :  { %505 = vmatmul.msk.f32.gmra.mxu2 %vm192_vm2, %v300_v17 }
 0x360   :  { %v255_v19 = vpop.xlane.xlu0 %254 }
 0x361   :  { %589 = vrcp.f32 %v255_v19 }
 0x367   :  { %v590_v20 = vpop.eup %589 }
 0x368   :  { %v277_v22 = vmul.f32 %v590_v20, %v255_v19  ;;  %v264_v23 = vpop.xlane.xlu0 %263 }
 0x369   :  { %591 = vrcp.f32 %v264_v23 }
 0x36a   :  { %v285_v25 = vsub.f32 2.0, %v277_v22 }
 0x36c   :  { %v293_v26 = vmul.f32 %v590_v20, %v285_v25 }
 0x36e   :  { %v301_v27 = vmul.f32 %v846_v40, %v293_v26 }
 0x36f   :  { %v592_v29 = vpop.eup %591 }
 0x370   :  { %v280_v30 = vmul.f32 %v592_v29, %v264_v23  ;;  %506 = vmatmul.msk.f32.gmra.mxu2 %vm192_vm2, %v301_v27 }
 0x372   :  { %v288_v31 = vsub.f32 2.0, %v280_v30 }
 0x374   :  { %v296_v32 = vmul.f32 %v592_v29, %v288_v31 }
 0x376   :  { %v304_v35 = vmul.f32 %v850_v42, %v296_v32  ;;  %v429_v42 = vld [vmem:[%s902_s3 + $0x18] sm:$0xff] }
 0x377   :  { %452 = vmatpush.msra.mxu3 %v429_v42 }
 0x378   :  { %507 = vmatmul.msk.f32.gmra.mxu2 %vm192_vm2, %v302_v34  ;;  %509 = vmatmul.msk.f32.gmra.mxu3 %vm192_vm2, %v304_v35 }
 0x379   :  { %453 = vmatpush.msra.mxu3 %v428_v43 }
 0x37b   :  { %454 = vmatpush.msra.mxu3 %v427_v44 }
 0x37d   :  { %455 = vmatpush.msra.mxu3 %v426_v37 }
 0x3c2   :  { %v370_v36 = vpop.f32.mrf.mxu2 }
 0x3c5   :  { %v388_v38 = vpop.f32.mrf.mxu3 }
 0x3c6   :  { %412 = vrot.lane.b32.xlu0 %v388_v38, %s653_s5 }
 0x3ca   :  { %v373_v39 = vpop.f32.mrf.mxu2 }
 0x3d2   :  { %v376_v11 = vpop.f32.mrf.mxu2 }
 0x3d3   :  { %396 = vrot.lane.b32.xlu2 %v376_v11, %s647_s27 }
 0x3da   :  { %v379_v14 = vpop.f32.mrf.mxu2 }
 0x3db   :  { %398 = vrot.lane.b32.xlu2 %v379_v14, %s647_s27 }
 0x3f3   :  { %v382_v40 = vpop.f32.mrf.mxu2 }
 0x3f4   :  { %404 = vrot.lane.b32.xlu1 %v382_v40, %s654_s9 }
 0x3fb   :  { %v385_v33 = vpop.f32.mrf.mxu2  ;;  %v391_v41 = vpop.f32.mrf.mxu3 }
 0x3fc   :  { %414 = vrot.lane.b32.xlu1 %v391_v41, %s653_s5  ;;  %406 = vrot.lane.b32.xlu0 %v385_v33, %s654_s9 }
 0x42d   :  { %v397_v45 = vpop.permute.xlu2 %396 }
 0x42e   :  { %v418_v46 = vsel %vm118_vm1, %v370_v36, %v397_v45 }
 0x435   :  { %v399_v51 = vpop.permute.xlu2 %398 }
 0x436   :  { %v419_v52 = vsel %vm118_vm1, %v373_v39, %v399_v51 }
 0x438   :  { %v413_v47 = vpop.permute.xlu0 %412 }
 0x466   :  { %v405_v48 = vpop.permute.xlu1 %404 }
 0x467   :  { %v421_v49 = vsel %vm420_vm3, %v418_v46, %v405_v48 }
 0x468   :  { %v424_v50 = vsel %vm423_vm4, %v421_v49, %v413_v47 }
 0x469   :  { %510 = vmatmul.msk.f32.vlgmr.msra.gmra.mxu3 %vm50_vm0, %v424_v50 }
 0x46e   :  { %v415_v53 = vpop.permute.xlu1 %414  ;;  %v407_v54 = vpop.permute.xlu0 %406 }
 0x46f   :  { %v422_v55 = vsel %vm420_vm3, %v419_v52, %v407_v54 }
 0x470   :  { %v425_v56 = vsel %vm423_vm4, %v422_v55, %v415_v53 }
 0x471   :  { %511 = vmatmul.msk.f32.gmra.mxu3 %vm50_vm0, %v425_v56 }
 0x4ec   :  { %v457_v58 = vpop.f32.mrf.mxu3 }
 0x4ed   :  { %v458_v59 = vadd.f32 %v560_v57, %v457_v58 }
 0x4ef   :  { %463 = vst.msk [vmem:[#allocation5] sm:$0xff] %vm50_vm0, %v458_v59 }
 0x4f4   :  { %v460_v60 = vpop.f32.mrf.mxu3 }
 0x4f5   :  { %v461_v61 = vadd.f32 %v560_v57, %v460_v60 }
 0x4f7   :  { %464 = vst.msk [vmem:[#allocation5 + $0x8] sm:$0xff] %vm50_vm0, %v461_v61 }
 0x4f8   :  { %477 = dma.vmem_to_hbm [thread:$0]  %s470_s18, 256, %s472_s21, [#allocation4], %s646_s26, %s646_s26, %s647_s27  }
 0x4f9   :  { %643 = dma.done.wait [#allocation4], 256  }
 0x4fa   :  { %644 = vsyncadd [#allocation4], 4294967040 }
 0x4fb   :  { %482 = vsyncpa [#allocation3], 1 }
 0x4fc   :  { %483 = vsyncpa [#allocation4], 1 }

</bundles_post_ra>
